<compile_context>
chip_gen: v7x
topology: tpu7x:2x2x1
jax: 0.10.0
libtpu: 0.0.40
codegen_flags: <defaults>
</compile_context>

<pallas_src>
import jax
import jax.numpy as jnp
from jax.experimental import pallas as pl
from jax.experimental.pallas import tpu as pltpu

DT = 0.02        # controller timestep
I_LIMIT = 2.0    # integral clamp
OBS_DIM = 12     # [pos(3), vel(3), target_pos(3), target_vel(3)]
ACT_DIM = 4
OUT_DIM = ACT_DIM + 3 + 3   # packed output slab: action | integral | pos_err
LANE = 128
DEFAULT_TR = 65536          # lane tile: ~320 B/row double-buffered ~= 20 MiB VMEM


def _dsl_pid_kernel(gcols_ref, mixer_ref, obs_ref, integ_ref, out_ref):
    # gcols_ref: [3, 4] f32 VMEM — columns are [Kp, Ki, Kd, ff] per axis (rows x/y/z)
    # mixer_ref: [3, 4] f32 SMEM — 3 -> 4 rotor mixer
    # obs_ref:   [12, TR] f32 (feature-major, R lane-dense)
    # integ_ref: [ 3, TR] f32
    # out_ref:   [10, TR] f32 = [tanh(rotor)(4) ; integral(3) ; pos_err(3)]

    # Ref-sliced loads: never keep the whole [12, TR] block live as one value.
    pos_err = obs_ref[6:9, :] - obs_ref[0:3, :]      # target_pos - pos  [3, TR]
    vel_err = obs_ref[9:12, :] - obs_ref[3:6, :]     # target_vel - vel  [3, TR]
    integ = jnp.clip(integ_ref[...] + pos_err * DT, -I_LIMIT, I_LIMIT)

    # Axis-vectorized PID: one [3, TR] FMA chain, gain columns broadcast along lanes.
    force = (gcols_ref[:, 0:1] * pos_err
             + gcols_ref[:, 1:2] * integ
             + gcols_ref[:, 2:3] * vel_err
             + gcols_ref[:, 3:4])                    # [3, TR]

    f0 = force[0:1, :]
    f1 = force[1:2, :]
    f2 = force[2:3, :]

    # 3 -> 4 rotor mixer as scalar*vector FMAs on the VPU (deliberately NOT the
    # MXU), stored row-by-row; all stores are lane-dense.  Direct sub-slab
    # stores avoid materializing a [10, TR] concatenated temporary.
    for j in range(ACT_DIM):
        out_ref[j:j + 1, :] = jnp.tanh(
            mixer_ref[0, j] * f0 + mixer_ref[1, j] * f1 + mixer_ref[2, j] * f2)
    out_ref[ACT_DIM:ACT_DIM + 3, :] = integ
    out_ref[ACT_DIM + 3:OUT_DIM, :] = pos_err


def dsl_pid_controller(obs_fm, integ_fm, gains, mixer, *, tr=DEFAULT_TR):
    """DSL-PID on feature-major inputs.

    obs_fm:   [12, R] (R = batch * num_agents, lane-dense)
    integ_fm: [ 3, R]
    gains:    [ 4, 3] rows = Kp / Ki / Kd / feed-forward
    mixer:    [ 3, 4]
    returns (action_fm [4, R], new_integral_fm [3, R], pos_err_fm [3, R])
    """
    _, R = obs_fm.shape

    # Lane tile: multiple of 128, capped by R (rounded up) — no host padding;
    # Pallas masks the ragged final block on writeback.
    tr = max(LANE, (int(tr) // LANE) * LANE)
    TR = min(tr, pl.cdiv(R, LANE) * LANE)
    grid = (pl.cdiv(R, TR),)

    gcols = gains.T.astype(jnp.float32)              # [3, 4] gain columns

    out = pl.pallas_call(
        _dsl_pid_kernel,
        grid=grid,
        out_shape=jax.ShapeDtypeStruct((OUT_DIM, R), jnp.float32),
        in_specs=[
            pl.BlockSpec((3, ACT_DIM), lambda i: (0, 0)),        # gains cols (VMEM)
            pl.BlockSpec(memory_space=pltpu.MemorySpace.SMEM),   # mixer [3, 4]
            pl.BlockSpec((OBS_DIM, TR), lambda i: (0, i)),       # obs   [12, TR]
            pl.BlockSpec((3, TR), lambda i: (0, i)),             # integ [3, TR]
        ],
        out_specs=pl.BlockSpec((OUT_DIM, TR), lambda i: (0, i)), # slab  [10, TR]
        compiler_params=pltpu.CompilerParams(
            dimension_semantics=("parallel",),                   # megacore on v7x
            # ~320 B/row double-buffered; bump past v5e's 16 MiB default but
            # stay well under v7x's 64 MiB physical VMEM at the default TR.
            vmem_limit_bytes=min(112 * 1024 * 1024,
                                 max(32 * 1024 * 1024, 400 * TR)),
        ),
    )(gcols, mixer.astype(jnp.float32),
      obs_fm.astype(jnp.float32), integ_fm.astype(jnp.float32))

    return (out[0:ACT_DIM, :],
            out[ACT_DIM:ACT_DIM + 3, :],
            out[ACT_DIM + 3:OUT_DIM, :])


class DSLPIDControllerWrapper:
    """JAX equivalent of the torch wrapper. TensorDict is emulated as a dict."""

    def __init__(self, gains, mixer):
        self.gains = gains
        self.mixer = mixer

    def forward(self, tensordict):
        state = tensordict["agents"]["observation"]              # [B, A, 12]
        B, A, _ = state.shape
        R = B * A

        # Feature-major relayout of the observation (one small XLA transpose).
        # TODO(synk): could be fused into the kernel by consuming natural
        # (TR, 12) blocks plus an in-kernel XLU transpose, at the cost of ~10x
        # VMEM lane padding on the obs buffer; kept on the host for now.
        obs_fm = state.reshape(R, OBS_DIM).T

        prev = tensordict.get("controller_state", None)
        if prev is None:
            # TODO(synk): TensorDict({}, batch_size=...) has no direct JAX
            # analogue; an empty controller state is materialized as zeros.
            prev = {
                "integral_error": jnp.zeros((3, R), jnp.float32),
                "last_pos_error": jnp.zeros((3, R), jnp.float32),
            }

        action_fm, new_integ_fm, pos_err_fm = dsl_pid_controller(
            obs_fm, prev["integral_error"], self.gains, self.mixer)

        action = action_fm.T.reshape(B, A, ACT_DIM)   # tiny 4-row relayout only

        tensordict["agents"]["action"] = action
        # Controller state is internal to the controller and is carried
        # feature-major [3, R] between calls to avoid relayout passes.
        # TODO(synk): last_pos_error is carried as state but never read by the
        # controller (derivative term uses velocity error, matching DSL-PID);
        # verify the torch controller does not use it for anti-windup.
        tensordict["controller_state"] = {
            "integral_error": new_integ_fm,
            "last_pos_error": pos_err_fm,
        }
        return tensordict

    __call__ = forward


if __name__ == "__main__":
    B, A = 2, 4  # batch, num_agents

    # Deterministic controller parameters (synthetic, not a checkpoint load).
    gains = jnp.array(
        [[0.40, 0.40, 1.25],    # Kp
         [0.05, 0.05, 0.05],    # Ki
         [0.20, 0.20, 0.50],    # Kd
         [0.00, 0.00, 0.265]],  # gravity feed-forward (m*g on z)
        jnp.float32)
    mixer = jnp.array(
        [[0.50, -0.50, -0.50,  0.50],
         [0.50,  0.50, -0.50, -0.50],
         [0.25,  0.25,  0.25,  0.25]],
        jnp.float32)

    key = jax.random.PRNGKey(0)
    obs = jax.random.normal(key, (B, A, OBS_DIM), dtype=jnp.float32)

    wrapper = DSLPIDControllerWrapper(gains, mixer)

    # First call: no controller_state in the tensordict (None branch).
    td = {"agents": {"observation": obs}}
    td = wrapper(td)

    # Second call: feature-major state carried over (non-None branch).
    td["agents"]["observation"] = obs * 0.5
    td = wrapper(td)

    jax.block_until_ready(td["agents"]["action"])
    jax.block_until_ready(td["controller_state"]["integral_error"])

    assert td["agents"]["action"].shape == (B, A, ACT_DIM)
    assert td["controller_state"]["integral_error"].shape == (3, B * A)
    assert td["controller_state"]["last_pos_error"].shape == (3, B * A)
    print("KERNEL_OK")
</pallas_src>

<mosaic_0001>
module attributes {stable_mosaic.version = 11 : i64} {
  func.func @_dsl_pid_kernel(%arg0: i32, %arg1: memref<3x4xf32, #tpu.memory_space<vmem>>, %arg2: memref<3x4xf32, #tpu.memory_space<smem>>, %arg3: memref<12x128xf32, #tpu.memory_space<vmem>>, %arg4: memref<3x128xf32, #tpu.memory_space<vmem>>, %arg5: memref<10x128xf32, #tpu.memory_space<vmem>>) attributes {dimension_semantics = [#tpu.dimension_semantics<parallel>], iteration_bounds = array<i64: 1>, scalar_prefetch = 0 : i64, scratch_operands = 0 : i64, tpu.core_type = #tpu.core_type<tc>, window_params = [{pipeline_mode = #tpu.pipeline_mode<synchronous>, transform_indices = @transform_0, window_bounds = array<i64: 3, 4>}, {transform_indices = @transform_1, window_bounds = array<i64: 3, 4>}, {transform_indices = @transform_2, window_bounds = array<i64: 12, 128>}, {transform_indices = @transform_3, window_bounds = array<i64: 3, 128>}, {transform_indices = @transform_4, window_bounds = array<i64: 10, 128>}]} {
    %c6 = arith.constant 6 : index
    %c0 = arith.constant 0 : index
    %0 = vector.load %arg3[%c6, %c0] : memref<12x128xf32, #tpu.memory_space<vmem>>, vector<3x128xf32>
    %c0_0 = arith.constant 0 : index
    %c0_1 = arith.constant 0 : index
    %1 = vector.load %arg3[%c0_0, %c0_1] : memref<12x128xf32, #tpu.memory_space<vmem>>, vector<3x128xf32>
    %2 = arith.subf %0, %1 : vector<3x128xf32>
    %c9 = arith.constant 9 : index
    %c0_2 = arith.constant 0 : index
    %3 = vector.load %arg3[%c9, %c0_2] : memref<12x128xf32, #tpu.memory_space<vmem>>, vector<3x128xf32>
    %c3 = arith.constant 3 : index
    %c0_3 = arith.constant 0 : index
    %4 = vector.load %arg3[%c3, %c0_3] : memref<12x128xf32, #tpu.memory_space<vmem>>, vector<3x128xf32>
    %5 = arith.subf %3, %4 : vector<3x128xf32>
    %c0_4 = arith.constant 0 : index
    %c0_5 = arith.constant 0 : index
    %6 = vector.load %arg4[%c0_4, %c0_5] : memref<3x128xf32, #tpu.memory_space<vmem>>, vector<3x128xf32>
    %cst = arith.constant 2.000000e-02 : f32
    %7 = vector.broadcast %cst : f32 to vector<3x128xf32>
    %8 = arith.mulf %2, %7 : vector<3x128xf32>
    %9 = arith.addf %6, %8 : vector<3x128xf32>
    %cst_6 = arith.constant -2.000000e+00 : f32
    %cst_7 = arith.constant 2.000000e+00 : f32
    %10 = vector.broadcast %cst_6 : f32 to vector<3x128xf32>
    %11 = arith.maximumf %10, %9 : vector<3x128xf32>
    %12 = vector.broadcast %cst_7 : f32 to vector<3x128xf32>
    %13 = arith.minimumf %12, %11 : vector<3x128xf32>
    %c0_8 = arith.constant 0 : index
    %c0_9 = arith.constant 0 : index
    %14 = vector.load %arg1[%c0_8, %c0_9] : memref<3x4xf32, #tpu.memory_space<vmem>>, vector<3x1xf32>
    %15 = vector.broadcast %14 : vector<3x1xf32> to vector<3x128xf32>
    %16 = arith.mulf %15, %2 : vector<3x128xf32>
    %c0_10 = arith.constant 0 : index
    %c1 = arith.constant 1 : index
    %17 = vector.load %arg1[%c0_10, %c1] : memref<3x4xf32, #tpu.memory_space<vmem>>, vector<3x1xf32>
    %18 = vector.broadcast %17 : vector<3x1xf32> to vector<3x128xf32>
    %19 = arith.mulf %18, %13 : vector<3x128xf32>
    %20 = arith.addf %16, %19 : vector<3x128xf32>
    %c0_11 = arith.constant 0 : index
    %c2 = arith.constant 2 : index
    %21 = vector.load %arg1[%c0_11, %c2] : memref<3x4xf32, #tpu.memory_space<vmem>>, vector<3x1xf32>
    %22 = vector.broadcast %21 : vector<3x1xf32> to vector<3x128xf32>
    %23 = arith.mulf %22, %5 : vector<3x128xf32>
    %24 = arith.addf %20, %23 : vector<3x128xf32>
    %c0_12 = arith.constant 0 : index
    %c3_13 = arith.constant 3 : index
    %25 = vector.load %arg1[%c0_12, %c3_13] : memref<3x4xf32, #tpu.memory_space<vmem>>, vector<3x1xf32>
    %26 = vector.broadcast %25 : vector<3x1xf32> to vector<3x128xf32>
    %27 = arith.addf %24, %26 : vector<3x128xf32>
    %28 = vector.extract_strided_slice %27 {offsets = [0, 0], sizes = [1, 128], strides = [1, 1]} : vector<3x128xf32> to vector<1x128xf32>
    %29 = vector.extract_strided_slice %27 {offsets = [1, 0], sizes = [1, 128], strides = [1, 1]} : vector<3x128xf32> to vector<1x128xf32>
    %30 = vector.extract_strided_slice %27 {offsets = [2, 0], sizes = [1, 128], strides = [1, 1]} : vector<3x128xf32> to vector<1x128xf32>
    %c0_14 = arith.constant 0 : index
    %c0_15 = arith.constant 0 : index
    %31 = memref.load %arg2[%c0_14, %c0_15] : memref<3x4xf32, #tpu.memory_space<smem>>
    %32 = vector.broadcast %31 : f32 to vector<1x128xf32>
    %33 = arith.mulf %32, %28 : vector<1x128xf32>
    %c1_16 = arith.constant 1 : index
    %c0_17 = arith.constant 0 : index
    %34 = memref.load %arg2[%c1_16, %c0_17] : memref<3x4xf32, #tpu.memory_space<smem>>
    %35 = vector.broadcast %34 : f32 to vector<1x128xf32>
    %36 = arith.mulf %35, %29 : vector<1x128xf32>
    %37 = arith.addf %33, %36 : vector<1x128xf32>
    %c2_18 = arith.constant 2 : index
    %c0_19 = arith.constant 0 : index
    %38 = memref.load %arg2[%c2_18, %c0_19] : memref<3x4xf32, #tpu.memory_space<smem>>
    %39 = vector.broadcast %38 : f32 to vector<1x128xf32>
    %40 = arith.mulf %39, %30 : vector<1x128xf32>
    %41 = arith.addf %37, %40 : vector<1x128xf32>
    %42 = math.tanh %41 : vector<1x128xf32>
    %c0_20 = arith.constant 0 : index
    %c0_21 = arith.constant 0 : index
    %43 = vector.load %arg5[%c0_20, %c0_21] : memref<10x128xf32, #tpu.memory_space<vmem>>, vector<1x128xf32>
    tpu.vector_store %arg5[%c0_20, %c0_21], %42 {strides = array<i32>} : memref<10x128xf32, #tpu.memory_space<vmem>>, vector<1x128xf32>,
    %c0_22 = arith.constant 0 : index
    %c1_23 = arith.constant 1 : index
    %44 = memref.load %arg2[%c0_22, %c1_23] : memref<3x4xf32, #tpu.memory_space<smem>>
    %45 = vector.broadcast %44 : f32 to vector<1x128xf32>
    %46 = arith.mulf %45, %28 : vector<1x128xf32>
    %c1_24 = arith.constant 1 : index
    %c1_25 = arith.constant 1 : index
    %47 = memref.load %arg2[%c1_24, %c1_25] : memref<3x4xf32, #tpu.memory_space<smem>>
    %48 = vector.broadcast %47 : f32 to vector<1x128xf32>
    %49 = arith.mulf %48, %29 : vector<1x128xf32>
    %50 = arith.addf %46, %49 : vector<1x128xf32>
    %c2_26 = arith.constant 2 : index
    %c1_27 = arith.constant 1 : index
    %51 = memref.load %arg2[%c2_26, %c1_27] : memref<3x4xf32, #tpu.memory_space<smem>>
    %52 = vector.broadcast %51 : f32 to vector<1x128xf32>
    %53 = arith.mulf %52, %30 : vector<1x128xf32>
    %54 = arith.addf %50, %53 : vector<1x128xf32>
    %55 = math.tanh %54 : vector<1x128xf32>
    %c1_28 = arith.constant 1 : index
    %c0_29 = arith.constant 0 : index
    %56 = vector.load %arg5[%c1_28, %c0_29] : memref<10x128xf32, #tpu.memory_space<vmem>>, vector<1x128xf32>
    tpu.vector_store %arg5[%c1_28, %c0_29], %55 {strides = array<i32>} : memref<10x128xf32, #tpu.memory_space<vmem>>, vector<1x128xf32>,
    %c0_30 = arith.constant 0 : index
    %c2_31 = arith.constant 2 : index
    %57 = memref.load %arg2[%c0_30, %c2_31] : memref<3x4xf32, #tpu.memory_space<smem>>
    %58 = vector.broadcast %57 : f32 to vector<1x128xf32>
    %59 = arith.mulf %58, %28 : vector<1x128xf32>
    %c1_32 = arith.constant 1 : index
    %c2_33 = arith.constant 2 : index
    %60 = memref.load %arg2[%c1_32, %c2_33] : memref<3x4xf32, #tpu.memory_space<smem>>
    %61 = vector.broadcast %60 : f32 to vector<1x128xf32>
    %62 = arith.mulf %61, %29 : vector<1x128xf32>
    %63 = arith.addf %59, %62 : vector<1x128xf32>
    %c2_34 = arith.constant 2 : index
    %c2_35 = arith.constant 2 : index
    %64 = memref.load %arg2[%c2_34, %c2_35] : memref<3x4xf32, #tpu.memory_space<smem>>
    %65 = vector.broadcast %64 : f32 to vector<1x128xf32>
    %66 = arith.mulf %65, %30 : vector<1x128xf32>
    %67 = arith.addf %63, %66 : vector<1x128xf32>
    %68 = math.tanh %67 : vector<1x128xf32>
    %c2_36 = arith.constant 2 : index
    %c0_37 = arith.constant 0 : index
    %69 = vector.load %arg5[%c2_36, %c0_37] : memref<10x128xf32, #tpu.memory_space<vmem>>, vector<1x128xf32>
    tpu.vector_store %arg5[%c2_36, %c0_37], %68 {strides = array<i32>} : memref<10x128xf32, #tpu.memory_space<vmem>>, vector<1x128xf32>,
    %c0_38 = arith.constant 0 : index
    %c3_39 = arith.constant 3 : index
    %70 = memref.load %arg2[%c0_38, %c3_39] : memref<3x4xf32, #tpu.memory_space<smem>>
    %71 = vector.broadcast %70 : f32 to vector<1x128xf32>
    %72 = arith.mulf %71, %28 : vector<1x128xf32>
    %c1_40 = arith.constant 1 : index
    %c3_41 = arith.constant 3 : index
    %73 = memref.load %arg2[%c1_40, %c3_41] : memref<3x4xf32, #tpu.memory_space<smem>>
    %74 = vector.broadcast %73 : f32 to vector<1x128xf32>
    %75 = arith.mulf %74, %29 : vector<1x128xf32>
    %76 = arith.addf %72, %75 : vector<1x128xf32>
    %c2_42 = arith.constant 2 : index
    %c3_43 = arith.constant 3 : index
    %77 = memref.load %arg2[%c2_42, %c3_43] : memref<3x4xf32, #tpu.memory_space<smem>>
    %78 = vector.broadcast %77 : f32 to vector<1x128xf32>
    %79 = arith.mulf %78, %30 : vector<1x128xf32>
    %80 = arith.addf %76, %79 : vector<1x128xf32>
    %81 = math.tanh %80 : vector<1x128xf32>
    %c3_44 = arith.constant 3 : index
    %c0_45 = arith.constant 0 : index
    %82 = vector.load %arg5[%c3_44, %c0_45] : memref<10x128xf32, #tpu.memory_space<vmem>>, vector<1x128xf32>
    tpu.vector_store %arg5[%c3_44, %c0_45], %81 {strides = array<i32>} : memref<10x128xf32, #tpu.memory_space<vmem>>, vector<1x128xf32>,
    %c4 = arith.constant 4 : index
    %c0_46 = arith.constant 0 : index
    %83 = vector.load %arg5[%c4, %c0_46] : memref<10x128xf32, #tpu.memory_space<vmem>>, vector<3x128xf32>
    tpu.vector_store %arg5[%c4, %c0_46], %13 {strides = array<i32>} : memref<10x128xf32, #tpu.memory_space<vmem>>, vector<3x128xf32>,
    %c7 = arith.constant 7 : index
    %c0_47 = arith.constant 0 : index
    %84 = vector.load %arg5[%c7, %c0_47] : memref<10x128xf32, #tpu.memory_space<vmem>>, vector<3x128xf32>
    tpu.vector_store %arg5[%c7, %c0_47], %2 {strides = array<i32>} : memref<10x128xf32, #tpu.memory_space<vmem>>, vector<3x128xf32>,
    return
  }
  func.func @transform_0(%arg0: i32) -> (i32, i32) {
    %c0_i32 = arith.constant 0 : i32
    %c0_i32_0 = arith.constant 0 : i32
    %c0_i32_1 = arith.constant 0 : i32
    return %c0_i32, %c0_i32_0 : i32, i32
  }
  func.func @transform_1(%arg0: i32) -> (i32, i32) {
    %c0_i32 = arith.constant 0 : i32
    %c0_i32_0 = arith.constant 0 : i32
    %c0_i32_1 = arith.constant 0 : i32
    return %c0_i32, %c0_i32_0 : i32, i32
  }
  func.func @transform_2(%arg0: i32) -> (i32, i32) {
    %c0_i32 = arith.constant 0 : i32
    %c0_i32_0 = arith.constant 0 : i32
    return %c0_i32, %arg0 : i32, i32
  }
  func.func @transform_3(%arg0: i32) -> (i32, i32) {
    %c0_i32 = arith.constant 0 : i32
    %c0_i32_0 = arith.constant 0 : i32
    return %c0_i32, %arg0 : i32, i32
  }
  func.func @transform_4(%arg0: i32) -> (i32, i32) {
    %c0_i32 = arith.constant 0 : i32
    %c0_i32_0 = arith.constant 0 : i32
    return %c0_i32, %arg0 : i32, i32
  }
}

</mosaic_0001>

<bundles_post_ra>
// kernel: tpu_custom_call.1
= control target key start
LH: loop header
LB: loop body
LE: loop exit
PB: predicated region body
PF: predicated region fallthrough
CT: control target
= control target key end

     0   :  { %9 = vsyncpa [#allocation3], 0  ;;  %s294_s0 = inlined_call_operand.vmem [shape: f32[3,4], index: 0, kind: input, shape index: {}]   ;;  %s295_s1 = inlined_call_operand.vmem [shape: f32[3,4], index: 1, kind: input, shape index: {}]   ;;  %s296_s2 = inlined_call_operand.vmem [shape: f32[12,8], index: 2, kind: input, shape index: {}]   ;;  %s297_s3 = inlined_call_operand.vmem [shape: f32[3,8], index: 3, kind: input, shape index: {}]   ;;  %s298_s4 = inlined_call_operand.vmem [shape: f32[10,8], index: 4, kind: output, shape index: {}]  }
   0x1   :  { %s18_s17 = sshll.u32 %s295_s1, 4  ;;  %s19_s17 = int_to_ptr.vmem [resolvable:$true] %s18_s17 }
   0x2   :  { %s178_s18 = scalar_lea.vmem %s19_s17, 64  ;;  %p183_p1 = scmp.lt.s32.totalorder %s19_s17, %s19_s17 }
   0x3   :  { %p179_p0 = scmp.ne.s32.totalorder %s19_s17, %s178_s18  ;;  %p184_p2 = scmp.lt.s32.totalorder %s178_s18, %s178_s18 }
   0x5   :  { %p185_p3 = por %p184_p2, %p183_p1 }
   0x7   :  { %p186_p4 = pnand %p185_p3, %p179_p0 }
   0x9   :  { %189 = shalt.err (!%p186_p4)
}
   0xa   :  { %s192_s19 = smov [#allocation2]  }
   0xb   :  { %21 = dma.vmem_to_smem %s19_s17, 64, %s192_s19, [#allocation3]  }
   0xc   :  { %190 = dma.done.wait [#allocation3], 64  }
   0xd   :  { %191 = vsyncadd [#allocation3], 4294967232 }
   0xe   :  { %29 = sfence }
   0xf   :  { %v41_v0 = vld [vmem:[%s294_s0] sm:$0x7]  ;;  %v193_v1 = vmov 0   ;;  %v194_v2 = vmov 2   ;;  %v30_v3 = vld [vmem:[%s296_s2 + $0x6] sm:$0x7] }
  0x10   :  { %165 = vset.pattern.permute.xlu0 %v193_v1  ;;  %167 = vset.pattern.permute.xlu1 %v194_v2  ;;  %v31_v4 = vld [vmem:[%s296_s2] sm:$0x7]  ;;  %v195_v8 = vmov 1   ;;  %v196_v9 = vmov 3   ;;  %v33_v12 = vld [vmem:[%s296_s2 + $0x9] sm:$0x7] }
  0x11   :  { %44 = vperm.xlu0 %165, %v41_v0   ;;  %55 = vperm.xlu1 %167, %v41_v0   ;;  %v32_v5 = vsub.f32 %v30_v3, %v31_v4  ;;  %v36_v6 = vld [vmem:[%s297_s3] sm:$0x7]  ;;  %v34_v13 = vld [vmem:[%s296_s2 + $0x3] sm:$0x7]  ;;  %s249_s7 = sld [smem:[#allocation2]]  ;;  %s255_s10 = sld [smem:[#allocation2 + $0x1]] }
  0x12   :  { %s251_s8 = sld [smem:[#allocation2 + $0x80]]  ;;  %v35_v15 = vsub.f32 %v33_v12, %v34_v13  ;;  %s257_s11 = sld [smem:[#allocation2 + $0x81]] }
  0x13   :  { %142 = vst [vmem:[%s298_s4 + $0x7] sm:$0x7] %v32_v5  ;;  %v37_v7 = vmul.f32 0.02, %v32_v5  ;;  %s253_s9 = sld [smem:[#allocation2 + $0x100]]  ;;  %s259_s12 = sld [smem:[#allocation2 + $0x101]] }
  0x14   :  { %s261_s13 = sld [smem:[#allocation2 + $0x2]]  ;;  %s265_s15 = sld [smem:[#allocation2 + $0x3]] }
  0x15   :  { %166 = vset.pattern.permute.xlu0 %v195_v8  ;;  %168 = vset.pattern.permute.xlu1 %v196_v9  ;;  %v38_v10 = vadd.f32 %v37_v7, %v36_v6  ;;  %s155_s2 = sld [smem:[#allocation2 + $0x82]]  ;;  %s267_s16 = sld [smem:[#allocation2 + $0x83]] }
  0x16   :  { %49 = vperm.xlu0 %166, %v41_v0   ;;  %61 = vperm.xlu1 %168, %v41_v0   ;;  %s263_s14 = sld [smem:[#allocation2 + $0x102]]  ;;  %s269_s17 = sld [smem:[#allocation2 + $0x103]] }
  0x17   :  { %v148_v11 = vclamps-f32 %v38_v10, 2.0  ;;  %v66_v24 = vstv %s249_s7  ;;  %v85_v31 = vstv %s255_s10 }
  0x18   :  { %v69_v25 = vstv %s251_s8  ;;  %v88_v27 = vstv %s257_s11 }
  0x19   :  { %141 = vst [vmem:[%s298_s4 + $0x4] sm:$0x7] %v148_v11  ;;  %v76_v26 = vstv %s253_s9  ;;  %v95_v28 = vstv %s259_s12 }
  0x1a   :  { %169 = vset.pattern.permute.xlu0 %v196_v9  ;;  %v104_v32 = vstv %s261_s13  ;;  %v123_v34 = vstv %s265_s15 }
  0x1b   :  { %v107_v29 = vstv %s155_s2  ;;  %v126_v35 = vstv %s267_s16 }
  0x1c   :  { %v114_v33 = vstv %s263_s14  ;;  %v133_v36 = vstv %s269_s17 }
  0x90   :  { %v45_v14 = vpop.permute.xlu0 %44  ;;  %v56_v16 = vpop.permute.xlu1 %55 }
  0x91   :  { %v47_v18 = vmul.f32 %v45_v14, %v32_v5  ;;  %v58_v20 = vmul.f32 %v56_v16, %v35_v15 }
  0x95   :  { %v50_v17 = vpop.permute.xlu0 %49  ;;  %v62_v22 = vpop.permute.xlu1 %61 }
  0x96   :  { %v52_v19 = vmul.f32 %v148_v11, %v50_v17 }
  0x98   :  { %v53_v21 = vadd.f32 %v52_v19, %v47_v18 }
  0x9a   :  { %v59_v23 = vadd.f32 %v58_v20, %v53_v21 }
  0x9c   :  { %v64_v30 = vadd.f32 %v62_v22, %v59_v23 }
  0x9e   :  { %v70_v37 = vmul.f32 %v69_v25, %v64_v30  ;;  %v77_v38 = vmul.f32 %v76_v26, %v64_v30  ;;  %v67_v39 = vmul.f32 %v66_v24, %v64_v30  ;;  %v89_v40 = vmul.f32 %v88_v27, %v64_v30 }
  0x9f   :  { %v96_v41 = vmul.f32 %v95_v28, %v64_v30  ;;  %v108_v42 = vmul.f32 %v107_v29, %v64_v30  ;;  %v86_v44 = vmul.f32 %v85_v31, %v64_v30  ;;  %v105_v45 = vmul.f32 %v104_v32, %v64_v30 }
  0xa0   :  { %v72_v43 = vrot.slane %v70_v37, 1  ;;  %v115_v46 = vmul.f32 %v114_v33, %v64_v30  ;;  %v79_v47 = vrot.slane %v77_v38, 2  ;;  %v91_v48 = vrot.slane %v89_v40, 1 }
  0xa1   :  { %v110_v49 = vrot.slane %v108_v42, 1  ;;  %v127_v50 = vmul.f32 %v126_v35, %v64_v30  ;;  %v98_v52 = vrot.slane %v96_v41, 2  ;;  %v124_v53 = vmul.f32 %v123_v34, %v64_v30 }
  0xa2   :  { %v74_v51 = vadd.f32 %v72_v43, %v67_v39  ;;  %v134_v54 = vmul.f32 %v133_v36, %v64_v30  ;;  %v93_v55 = vadd.f32 %v91_v48, %v86_v44  ;;  %v117_v57 = vrot.slane %v115_v46, 2 }
  0xa3   :  { %v112_v56 = vadd.f32 %v110_v49, %v105_v45  ;;  %v129_v58 = vrot.slane %v127_v50, 1 }
  0xa4   :  { %v81_v59 = vadd.f32 %v79_v47, %v74_v51  ;;  %v100_v60 = vadd.f32 %v98_v52, %v93_v55  ;;  %v136_v63 = vrot.slane %v134_v54, 2 }
  0xa5   :  { %v119_v61 = vadd.f32 %v117_v57, %v112_v56  ;;  %v131_v62 = vadd.f32 %v129_v58, %v124_v53 }
  0xa6   :  { %170 = vtanh.f32 %v81_v59 }
  0xa7   :  { %172 = vtanh.f32 %v100_v60  ;;  %v138_v0 = vadd.f32 %v136_v63, %v131_v62 }
  0xa8   :  { %174 = vtanh.f32 %v119_v61 }
  0xa9   :  { %176 = vtanh.f32 %v138_v0 }
  0xb0   :  { %v171_v1 = vpop.eup %170 }
  0xb1   :  { %v173_v2 = vpop.eup %172  ;;  %83 = vst [vmem:[%s298_s4] sm:$0x1] %v171_v1 }
  0xb2   :  { %v175_v3 = vpop.eup %174  ;;  %102 = vst [vmem:[%s298_s4 + $0x1] sm:$0x1] %v173_v2 }
  0xb3   :  { %v177_v4 = vpop.eup %176  ;;  %121 = vst [vmem:[%s298_s4 + $0x2] sm:$0x1] %v175_v3 }
  0xb4   :  { %140 = vst [vmem:[%s298_s4 + $0x3] sm:$0x1] %v177_v4 }
  0xb5   :  { %147 = vsyncpa [#allocation3], 1 }

</bundles_post_ra>
